<compile_context>
chip_gen: v7x
topology: tpu7x:2x2x1
jax: 0.10.0
libtpu: 0.0.40
codegen_flags: <defaults>
</compile_context>

<pallas_src>
import jax
import jax.numpy as jnp
from jax.experimental import pallas as pl
from jax.experimental.pallas import tpu as pltpu


def _round_up(x, m):
    return ((x + m - 1) // m) * m


def _down_conv_kernel(x_ref, w_ref, t_ref, o_ref):
    # x_ref: (1, K, Tsp)  bf16   flattened (c,kd,kh,kw) windows, spatial on lanes
    # w_ref: (O, K)       bf16   conv weight with BN scale folded in
    # t_ref: (O, 1)       f32    folded BN shift
    # o_ref: (1, O, Tsp)  f32
    y = jnp.dot(w_ref[...], x_ref[0],
                preferred_element_type=jnp.float32)        # MXU, f32 accumulation
    y = y + t_ref[...]                                     # BatchNorm (folded shift)
    o_ref[0] = jnp.maximum(y, 0.0).astype(o_ref.dtype)     # ReLU, lane-dense store


def downsampling_conv_block(x, conv_w, bn_gamma, bn_beta, bn_mean, bn_var,
                            eps=1e-5, tile_sp=None,
                            compute_dtype=jnp.bfloat16):
    """x: (N, C, D, H, W).  conv_w: (O, C, 2, 2, 2)  (PyTorch OIDHW, k=2, s=2).
    Returns (N, O, D//2, H//2, W//2) float32 (eval-mode BatchNorm folded)."""
    N, C, D, H, W = x.shape
    O = conv_w.shape[0]
    assert conv_w.shape == (O, C, 2, 2, 2), conv_w.shape
    Do, Ho, Wo = D // 2, H // 2, W // 2
    Sp = Do * Ho * Wo
    K = 8 * C
    f32 = jnp.float32

    # ---- fold eval-mode BatchNorm into the conv weight + per-channel shift ----
    inv_std = 1.0 / jnp.sqrt(bn_var.astype(f32) + eps)
    scale = bn_gamma.astype(f32) * inv_std                        # (O,)
    shift = bn_beta.astype(f32) - bn_mean.astype(f32) * scale     # (O,)
    w_folded = (conv_w.reshape(O, K).astype(f32) * scale[:, None]).astype(compute_dtype)
    shift = shift.reshape(O, 1)

    # ---- lane-dense slab (N, K, Sp); K-axis ordered (c, kd, kh, kw) ----------
    # Crop odd spatial dims (PyTorch floor semantics for k=2, s=2), then cast
    # to bf16 BEFORE the transpose so the (ideally DMA-fused) rearrange moves
    # half the bytes.
    xr = x[:, :, :2 * Do, :2 * Ho, :2 * Wo].astype(compute_dtype)
    xr = xr.reshape(N, C, Do, 2, Ho, 2, Wo, 2)
    xr = jnp.transpose(xr, (0, 1, 3, 5, 7, 2, 4, 6)).reshape(N, K, Sp)

    isz = jnp.dtype(compute_dtype).itemsize

    # ---- tile selection: lane-dense, VMEM-aware, >= 2 grid steps -------------
    if tile_sp is None:
        # Bytes per lane column across double-buffered input + output blocks.
        per_col_bytes = 2 * K * isz + 2 * O * 4
        vmem_target = 12 * 1024 * 1024                 # headroom under 16 MiB (v5e)
        cap = max(128, (vmem_target // per_col_bytes) // 128 * 128)
        tile_sp = min(_round_up(Sp, 128), 2048, cap)
        if N * pl.cdiv(Sp, tile_sp) < 2 and tile_sp > 128:
            tile_sp = max(128, _round_up(pl.cdiv(Sp, 2), 128))   # keep both v7x TCs busy
    Sp_pad = _round_up(Sp, tile_sp)
    if Sp_pad != Sp:
        xr = jnp.pad(xr, ((0, 0), (0, 0), (0, Sp_pad - Sp)))

    grid = (N, Sp_pad // tile_sp)

    # ---- explicit VMEM budget (v7x: 64 MiB phys; v5e scoped default 16 MiB) --
    block_bytes = (2 * K * tile_sp * isz        # double-buffered input slabs
                   + 2 * O * tile_sp * 4        # double-buffered output blocks
                   + O * K * isz + O * 4)       # resident weight + shift
    vmem_limit = int(min(48 * 1024 * 1024,
                         max(32 * 1024 * 1024, 4 * block_bytes)))

    cost = pl.CostEstimate(
        flops=2 * N * Sp_pad * O * K,
        transcendentals=0,
        bytes_accessed=(N * K * Sp_pad * isz + O * K * isz + O * 4
                        + N * O * Sp_pad * 4),
    )

    out = pl.pallas_call(
        _down_conv_kernel,
        out_shape=jax.ShapeDtypeStruct((N, O, Sp_pad), f32),
        grid_spec=pltpu.PrefetchScalarGridSpec(
            num_scalar_prefetch=0,
            grid=grid,
            in_specs=[
                pl.BlockSpec((1, K, tile_sp), lambda n, j: (n, 0, j)),
                pl.BlockSpec((O, K), lambda n, j: (0, 0)),
                pl.BlockSpec((O, 1), lambda n, j: (0, 0)),
            ],
            out_specs=pl.BlockSpec((1, O, tile_sp), lambda n, j: (n, 0, j)),
        ),
        compiler_params=pltpu.CompilerParams(
            dimension_semantics=("parallel", "parallel"),
            vmem_limit_bytes=vmem_limit,
            allow_input_fusion=[True, False, False],
        ),
        cost_estimate=cost,
    )(xr, w_folded, shift)

    # (N, O, Sp) -> NCDHW is a free reshape (no transpose).
    return out[:, :, :Sp].reshape(N, O, Do, Ho, Wo)


# --------------------------- references (for the demo) ------------------------

def _reference_f32(x, conv_w, bn_gamma, bn_beta, bn_mean, bn_var, eps=1e-5):
    """Full-f32 PyTorch semantics: Conv3d(k=2,s=2,bias=False) + BN(eval) + ReLU."""
    N, C, D, H, W = x.shape
    O = conv_w.shape[0]
    Do, Ho, Wo = D // 2, H // 2, W // 2
    xr = x[:, :, :2 * Do, :2 * Ho, :2 * Wo].reshape(N, C, Do, 2, Ho, 2, Wo, 2)
    y = jnp.einsum('ncdahbwe,ocabe->nodhw', xr, conv_w,
                   precision=jax.lax.Precision.HIGHEST)
    inv_std = 1.0 / jnp.sqrt(bn_var + eps)
    s = (bn_gamma * inv_std).reshape(1, O, 1, 1, 1)
    t = (bn_beta - bn_mean * bn_gamma * inv_std).reshape(1, O, 1, 1, 1)
    return jnp.maximum(y * s + t, 0.0)


def _reference_bf16_inputs(x, conv_w, bn_gamma, bn_beta, bn_mean, bn_var, eps=1e-5):
    """Mirrors the kernel's numerics exactly: BN scale folded into the weight,
    operands rounded to bf16, f32 accumulation / shift / ReLU."""
    N, C, D, H, W = x.shape
    O = conv_w.shape[0]
    Do, Ho, Wo = D // 2, H // 2, W // 2
    K = 8 * C
    inv_std = 1.0 / jnp.sqrt(bn_var + eps)
    scale = bn_gamma * inv_std
    shift = bn_beta - bn_mean * scale
    wf = (conv_w.reshape(O, K) * scale[:, None]).astype(jnp.bfloat16).astype(jnp.float32)
    xr = x[:, :, :2 * Do, :2 * Ho, :2 * Wo].astype(jnp.bfloat16).astype(jnp.float32)
    xr = xr.reshape(N, C, Do, 2, Ho, 2, Wo, 2)
    xr = jnp.transpose(xr, (0, 1, 3, 5, 7, 2, 4, 6)).reshape(N, K, Do * Ho * Wo)
    y = jnp.einsum('nks,ok->nos', xr, wf,
                   precision=jax.lax.Precision.HIGHEST) + shift[None, :, None]
    return jnp.maximum(y, 0.0).reshape(N, O, Do, Ho, Wo)


if __name__ == "__main__":
    key = jax.random.PRNGKey(0)
    k_x, k_w, k_g, k_b, k_m, k_v = jax.random.split(key, 6)

    N, C, O = 2, 4, 8
    D, H, W = 8, 16, 16                       # NCDHW input: (2, 4, 8, 16, 16)

    x = jax.random.normal(k_x, (N, C, D, H, W), dtype=jnp.float32)
    conv_w = 0.1 * jax.random.normal(k_w, (O, C, 2, 2, 2), dtype=jnp.float32)
    bn_gamma = 1.0 + 0.1 * jax.random.normal(k_g, (O,), dtype=jnp.float32)
    bn_beta = 0.1 * jax.random.normal(k_b, (O,), dtype=jnp.float32)
    bn_mean = 0.1 * jax.random.normal(k_m, (O,), dtype=jnp.float32)
    bn_var = jnp.abs(jax.random.normal(k_v, (O,), dtype=jnp.float32)) + 0.5

    fn = jax.jit(downsampling_conv_block)
    out = jax.block_until_ready(fn(x, conv_w, bn_gamma, bn_beta, bn_mean, bn_var))

    assert out.shape == (N, O, D // 2, H // 2, W // 2), out.shape

    # Tight structural check against an identically-rounded (bf16 operands) ref.
    ref_bf16 = _reference_bf16_inputs(x, conv_w, bn_gamma, bn_beta, bn_mean, bn_var)
    assert jnp.allclose(out, ref_bf16, atol=1e-4, rtol=1e-4), \
        float(jnp.max(jnp.abs(out - ref_bf16)))

    # Loose semantic check against the full-f32 PyTorch-equivalent reference
    # (slack only accounts for the deliberate bf16 input rounding).
    ref_f32 = _reference_f32(x, conv_w, bn_gamma, bn_beta, bn_mean, bn_var)
    assert jnp.allclose(out, ref_f32, atol=1e-1, rtol=1e-1), \
        float(jnp.max(jnp.abs(out - ref_f32)))

    print("KERNEL_OK")
</pallas_src>

<mosaic_0001>
module attributes {stable_mosaic.version = 11 : i64} {
  func.func @_down_conv_kernel(%arg0: i32, %arg1: i32, %arg2: memref<1x32x256xbf16, #tpu.memory_space<vmem>>, %arg3: memref<8x32xbf16, #tpu.memory_space<vmem>>, %arg4: memref<8x1xf32, #tpu.memory_space<vmem>>, %arg5: memref<1x8x256xf32, #tpu.memory_space<vmem>>) attributes {dimension_semantics = [#tpu.dimension_semantics<parallel>, #tpu.dimension_semantics<parallel>], iteration_bounds = array<i64: 2, 1>, scalar_prefetch = 0 : i64, scratch_operands = 0 : i64, tpu.core_type = #tpu.core_type<tc>, window_params = [{transform_indices = @transform_0, window_bounds = array<i64: 1, 32, 256>}, {pipeline_mode = #tpu.pipeline_mode<synchronous>, transform_indices = @transform_1, window_bounds = array<i64: 8, 32>}, {pipeline_mode = #tpu.pipeline_mode<synchronous>, transform_indices = @transform_2, window_bounds = array<i64: 8, 1>}, {transform_indices = @transform_3, window_bounds = array<i64: 1, 8, 256>}]} {
    %c0 = arith.constant 0 : index
    %c0_0 = arith.constant 0 : index
    %0 = vector.load %arg3[%c0, %c0_0] : memref<8x32xbf16, #tpu.memory_space<vmem>>, vector<8x32xbf16>
    %c0_1 = arith.constant 0 : index
    %c0_2 = arith.constant 0 : index
    %c0_3 = arith.constant 0 : index
    %1 = vector.load %arg2[%c0_1, %c0_2, %c0_3] : memref<1x32x256xbf16, #tpu.memory_space<vmem>>, vector<1x32x256xbf16>
    %2 = vector.shape_cast %1 : vector<1x32x256xbf16> to vector<32x256xbf16>
    %cst = arith.constant dense<0.000000e+00> : vector<8x256xf32>
    %3 = tpu.matmul %0, %2, %cst {dimension_numbers = #tpu.dot_dimension_numbers<[1], [0], [0], [1], [0, 0, 1, 1], [], []>} : vector<8x32xbf16>, vector<32x256xbf16>, vector<8x256xf32> -> vector<8x256xf32>
    %c0_4 = arith.constant 0 : index
    %c0_5 = arith.constant 0 : index
    %4 = vector.load %arg4[%c0_4, %c0_5] : memref<8x1xf32, #tpu.memory_space<vmem>>, vector<8x1xf32>
    %5 = vector.broadcast %4 : vector<8x1xf32> to vector<8x256xf32>
    %6 = arith.addf %3, %5 : vector<8x256xf32>
    %cst_6 = arith.constant 0.000000e+00 : f32
    %7 = vector.broadcast %cst_6 : f32 to vector<8x256xf32>
    %8 = arith.maximumf %6, %7 : vector<8x256xf32>
    %c0_7 = arith.constant 0 : index
    %c0_8 = arith.constant 0 : index
    %c0_9 = arith.constant 0 : index
    %9 = vector.load %arg5[%c0_7, %c0_8, %c0_9] : memref<1x8x256xf32, #tpu.memory_space<vmem>>, vector<1x8x256xf32>
    %10 = vector.shape_cast %9 : vector<1x8x256xf32> to vector<8x256xf32>
    %11 = vector.shape_cast %8 : vector<8x256xf32> to vector<1x8x256xf32>
    tpu.vector_store %arg5[%c0_7, %c0_8, %c0_9], %11 {strides = array<i32>} : memref<1x8x256xf32, #tpu.memory_space<vmem>>, vector<1x8x256xf32>,
    return
  }
  func.func @transform_0(%arg0: i32, %arg1: i32) -> (i32, i32, i32) {
    %c0_i32 = arith.constant 0 : i32
    %c0_i32_0 = arith.constant 0 : i32
    return %arg0, %c0_i32, %arg1 : i32, i32, i32
  }
  func.func @transform_1(%arg0: i32, %arg1: i32) -> (i32, i32) {
    %c0_i32 = arith.constant 0 : i32
    %c0_i32_0 = arith.constant 0 : i32
    %c0_i32_1 = arith.constant 0 : i32
    return %c0_i32, %c0_i32_0 : i32, i32
  }
  func.func @transform_2(%arg0: i32, %arg1: i32) -> (i32, i32) {
    %c0_i32 = arith.constant 0 : i32
    %c0_i32_0 = arith.constant 0 : i32
    %c0_i32_1 = arith.constant 0 : i32
    return %c0_i32, %c0_i32_0 : i32, i32
  }
  func.func @transform_3(%arg0: i32, %arg1: i32) -> (i32, i32, i32) {
    %c0_i32 = arith.constant 0 : i32
    %c0_i32_0 = arith.constant 0 : i32
    return %arg0, %c0_i32, %arg1 : i32, i32, i32
  }
}

</mosaic_0001>

<bundles_post_ra>
// kernel: downsampling_conv_block.1
= control target key start
LH: loop header
LB: loop body
LE: loop exit
PB: predicated region body
PF: predicated region fallthrough
CT: control target
= control target key end

     0   :  { %s473_s12 = smov 0   ;;  %s475_s13 = smov 0   ;;  %s512_s0 = inlined_call_operand.vmem [shape: bf16[2,32,256], index: 0, kind: input, shape index: {}]   ;;  %s513_s1 = inlined_call_operand.vmem [shape: bf16[8,32], index: 1, kind: input, shape index: {}]   ;;  %s514_s2 = inlined_call_operand.vmem [shape: f32[8,1], index: 2, kind: input, shape index: {}]   ;;  %s515_s3 = inlined_call_operand.vmem [shape: f32[2,8,256], index: 3, kind: output, shape index: {}]  }
   0x1   :  { %s477_s14 = smov 0  }
   0x2 LB: > { %s25_s15 = sadd.s32 1, %s446_s13  ;;  %p382_p0 = scmp.ge.s32.totalorder %s450_s14, 1  ;;  %s450_s14 = sphi %s477_s14, %s13_s14   ;;  %s446_s13 = sphi %s475_s13, %s517_s13   ;;  %s442_s12 = sphi %s473_s12, %s516_s12  }
   0x3   : > { %p27_p1 = scmp.ge.s32.totalorder %s25_s15, 2  ;;  %p158_p2 = scmp.lt.s32.totalorder %s450_s14, 3 }
   0x5   : > { %s519_s15 = smov (%p27_p1, %s25_s15), 0  ;;  %p159_p3 = pnand %p382_p0, %p158_p2 }
   0x6   : > { %p191_p4 = scmp.lt.s32.totalorder (!%p159_p3), %s442_s12, 1  ;;  %v216_v0 = vld [vmem:[%s514_s2] sm:$0xff] (!%p159_p3)  ;;  %v452_v1 = vmov (!%p159_p3), 0   ;;  %vm242_vm0 = vcmask (!%p159_p3), 261120  }
   0x7   : > { %162 = sbr.rel (%p159_p3) target bundleno = 244 (0xf4), region = 32  ;;  %278 = vmatprep.mubr.bf16.mxu0 (!%p159_p3), %v452_v1  ;;  %421 = vset.pattern.permute.xlu0 (!%p159_p3), %v452_v1  ;;  %v211_v6 = vld [vmem:[%s513_s1] sm:$0xf] (!%p159_p3) }
   0x8   : > { %219 = vperm.xlu0 (!%p159_p3), %421, %v216_v0  }
   0xe   : > { %s521_s12 = smov (!%p191_p4, %s442_s12), 1 }
   0xf   : > { %s394_s18 = sshll.u32 %s521_s12, 5  ;;  %s395_s24 = sshll.u32 %s521_s12, 4 }
  0x10   : > { %s198_s21 = scalar_lea.vmem %s512_s0, %s394_s18  ;;  %s208_s27 = scalar_lea.vmem %s515_s3, %s395_s24 }
  0x11   : > { %v422_v2 = vld [vmem:[%s198_s21 + $0x4] ss:$8 sps:$4 sm:$0xff]   ;;  %v424_v3 = vld [vmem:[%s198_s21] ss:$8 sps:$4 sm:$0xff]   ;;  %v425_v4 = vld [vmem:[%s198_s21 + $0x14] ss:$8 sps:$4 sm:$0xff]  }
  0x12   : > { %246 = vmatprep.subr.bf16.mxu0 %v422_v2  ;;  %v427_v5 = vld [vmem:[%s198_s21 + $0x10] ss:$8 sps:$4 sm:$0xff]  }
  0x13   : > { %247 = vmatpush1.bf16.msra.mxu0 %v424_v3 }
  0x14   : > { %248 = vmatprep.subr.bf16.mxu0 %v425_v4 }
  0x17   : > { %249 = vmatpush1.bf16.msra.mxu0 %v427_v5 }
  0x1a   : > { %391 = vmatmul.mubr.msk.bf16.vlgmr.msra.gmra.mrb[0].mxu0 %vm242_vm0, %v211_v6 }
  0x87   : > { %v220_v7 = vpop.permute.xlu0 %219 }
  0xed   : > { %v280_v8 = vpop.f32.mrb[0].mxu0 }
  0xee   : > { %v281_v9 = vadd.f32 %v280_v8, %v220_v7  ;;  %v282_v10 = vpop.f32.mrb[1].mxu0 }
  0xef   : > { %v283_v11 = vadd.f32 %v282_v10, %v220_v7  ;;  %v284_v12 = vpop.f32.mrb[2].mxu0 }
  0xf0   : > { %v287_v13 = vmax.f32 %v281_v9, 0.0  ;;  %v285_v14 = vpop.f32.mrb[3].mxu0 }
  0xf1   : > { %v288_v15 = vmax.f32 %v283_v11, 0.0 }
  0xf2   : > { %289 = vst [vmem:[%s208_s27] sm:$0xff] %v287_v13 }
  0xf3   : > { %290 = vst [vmem:[%s208_s27 + $0x8] sm:$0xff] %v288_v15 }
  0xf4 PF: > { %s13_s14 = sadd.s32 1, %s450_s14   ;;  %s516_s12 = smov %s446_s13 }
  0xf5   : > { %p10_p5 = scmp.ge.s32.totalorder %s13_s14, 4   ;;  %s517_s13 = smov %s519_s15 }
  0xf7   :  { %12 = sbr.rel (!%p10_p5) target bundleno = 2 (0x2), region = 62 }

</bundles_post_ra>
